<compile_context>
chip_gen: v7x
topology: tpu7x:2x2x1
jax: 0.10.0
libtpu: 0.0.40
codegen_flags: <defaults>
</compile_context>

<pallas_src>
import math

import jax
import jax.numpy as jnp
from jax.experimental import pallas as pl
from jax.experimental.pallas import tpu as pltpu


LANE = 128
NEG_PAD = -1e30  # bias value for padded class lanes -> exp() == 0 in softmax


def _round_up(v, m):
    return ((v + m - 1) // m) * m


def _make_cls_gcn_kernel(tk):
    def kernel(adj_ref, xw_ref, dr_ref, b_ref, out_ref, acc_ref):
        """One (row_tile, k_tile) step of  log_softmax(d_r * ((A+I) @ XW_s) + b)."""
        k = pl.program_id(1)

        @pl.when(k == 0)
        def _():
            acc_ref[...] = jnp.zeros_like(acc_ref)

        # int8 -> f32 -> bf16 widen (VPU), then bf16 MXU dot with f32 accumulate.
        a_tile = adj_ref[...].astype(jnp.float32).astype(jnp.bfloat16)
        k0 = pl.multiple_of(k * tk, tk)
        xw_tile = xw_ref[pl.ds(k0, tk), :]  # resident panel, dynamic K slice
        acc_ref[...] += jnp.dot(a_tile, xw_tile, preferred_element_type=jnp.float32)

        @pl.when(k == pl.num_programs(1) - 1)
        def _():
            # Row-side D^{-1/2} scale + bias, then log_softmax over class lanes
            # (all in f32; padded lanes hold bias -1e30 -> exp() == 0).
            z = dr_ref[...] * acc_ref[...] + b_ref[...]
            m = jnp.max(z, axis=1, keepdims=True)
            lse = jnp.log(jnp.sum(jnp.exp(z - m), axis=1, keepdims=True)) + m
            out_ref[...] = z - lse

    return kernel


def cls_gcn_forward(x, edge_index, w, b, *, tm=512, tk=512):
    """CLS.forward: log_softmax(GCNConv(x, edge_index), dim=1)."""
    n, f_in = x.shape
    c = w.shape[1]

    # ---- pad sizes (common multiple so the grid is exact for tm != tk) -----
    n_p = _round_up(n, math.lcm(tm, tk))
    c_p = _round_up(c, LANE)

    # ---- plain-JAX glue (done once, like cached=True) ----------------------
    src, dst = edge_index[0], edge_index[1]

    # Single scatter of (A + I) straight into the padded int8 buffer.
    diag = jnp.arange(n, dtype=jnp.int32)
    adj_p = jnp.zeros((n_p, n_p), jnp.int8)
    adj_p = adj_p.at[dst, src].add(jnp.int8(1))      # scatter-add edges (PyG)
    adj_p = adj_p.at[diag, diag].add(jnp.int8(1))    # append self-loops

    # O(E) degree and D^{-1/2}.
    deg = jnp.zeros((n,), jnp.float32).at[dst].add(1.0) + 1.0
    d_inv_sqrt = jnp.where(deg > 0, jax.lax.rsqrt(deg), 0.0)

    # XW once in f32, column-side D^{-1/2} pre-applied, then bf16 for the MXU.
    xw = (x.astype(jnp.float32) @ w.astype(jnp.float32)) * d_inv_sqrt[:, None]
    xw_p = (
        jnp.zeros((n_p, c_p), jnp.bfloat16).at[:n, :c].set(xw.astype(jnp.bfloat16))
    )

    dr_p = jnp.zeros((n_p, 1), jnp.float32).at[:n, 0].set(d_inv_sqrt)
    b_p = jnp.full((1, c_p), NEG_PAD, jnp.float32).at[0, :c].set(b.astype(jnp.float32))

    grid = (n_p // tm, n_p // tk)

    # Corrected, advisory cost estimate.
    cost = pl.CostEstimate(
        flops=2 * n_p * n_p * c_p,
        transcendentals=n_p * c_p + n_p,
        bytes_accessed=(
            n_p * n_p * 1        # (A + I) int8 stream (dominant)
            + n_p * c_p * 2      # resident XW bf16 (read once)
            + n_p * 4            # d_inv_sqrt rows
            + c_p * 4            # bias
            + n_p * c_p * 4      # output f32
        ),
    )

    # VMEM budget: double-buffered adj tile + resident XW + acc + out tile.
    vmem_need = (
        2 * tm * tk              # adj int8, double-buffered
        + 2 * n_p * c_p * 2      # XW bf16 (resident, allow 2 buffers)
        + tm * c_p * 4           # f32 accumulator scratch
        + 2 * tm * c_p * 4       # out tile f32, double-buffered
        + 2 * tm * 4 + 2 * c_p * 4
    )
    vmem_limit = min(48 * 1024 * 1024, max(32 * 1024 * 1024, 2 * vmem_need))

    out_p = pl.pallas_call(
        _make_cls_gcn_kernel(tk),
        out_shape=jax.ShapeDtypeStruct((n_p, c_p), jnp.float32),
        grid_spec=pltpu.PrefetchScalarGridSpec(
            num_scalar_prefetch=0,
            grid=grid,
            in_specs=[
                pl.BlockSpec((tm, tk), lambda i, k: (i, k)),     # (A + I) int8 tile
                pl.BlockSpec((n_p, c_p), lambda i, k: (0, 0)),   # XW panel (resident)
                pl.BlockSpec((tm, 1), lambda i, k: (i, 0)),      # D^-1/2 rows
                pl.BlockSpec((1, c_p), lambda i, k: (0, 0)),     # bias (resident)
            ],
            out_specs=pl.BlockSpec((tm, c_p), lambda i, k: (i, 0)),
            scratch_shapes=[pltpu.VMEM((tm, c_p), jnp.float32)],
        ),
        compiler_params=pltpu.CompilerParams(
            dimension_semantics=("parallel", "arbitrary"),
            vmem_limit_bytes=vmem_limit,
        ),
        cost_estimate=cost,
    )(adj_p, xw_p, dr_p, b_p)

    return out_p[:n, :c]


def _glorot(key, shape):
    limit = jnp.sqrt(6.0 / (shape[0] + shape[1]))
    return jax.random.uniform(key, shape, jnp.float32, -limit, limit)


if __name__ == "__main__":
    # Small graph: N=200 nodes, d_in=8 features, d_out=16 classes, E=800 edges.
    N, D_IN, D_OUT, E = 200, 8, 16, 800

    key = jax.random.PRNGKey(0)
    kx, ke, kw = jax.random.split(key, 3)

    x = jax.random.normal(kx, (N, D_IN), jnp.float32)
    edge_index = jax.random.randint(ke, (2, E), 0, N, dtype=jnp.int32)
    w = _glorot(kw, (D_IN, D_OUT))
    b = jnp.zeros((D_OUT,), jnp.float32)

    # f32 reference (same adjacency construction) for an end-to-end check.
    src, dst = edge_index[0], edge_index[1]
    adj_ref = jnp.zeros((N, N), jnp.float32).at[dst, src].add(1.0) + jnp.eye(N)
    deg_ref = adj_ref.sum(axis=1)
    dis_ref = jax.lax.rsqrt(deg_ref)
    a_hat_ref = adj_ref * dis_ref[:, None] * dis_ref[None, :]
    ref = jax.nn.log_softmax(a_hat_ref @ (x @ w) + b, axis=1)

    # (a) small tiles: N pads to 256 -> 2x2 grid, exercising K accumulation
    #     and the row-parallel axis.
    out_small = jax.block_until_ready(
        cls_gcn_forward(x, edge_index, w, b, tm=128, tk=128)
    )
    # (b) default large tiles (single-tile grid at this demo size).
    out_big = jax.block_until_ready(cls_gcn_forward(x, edge_index, w, b))

    for out in (out_small, out_big):
        assert out.shape == (N, D_OUT)
        # log_softmax rows must exponentiate-sum to 1.
        assert jnp.allclose(jnp.sum(jnp.exp(out), axis=1), 1.0, atol=1e-3)
        assert float(jnp.max(jnp.abs(out - ref))) < 0.15  # bf16-MXU tolerance

    print("KERNEL_OK")
</pallas_src>

<mosaic_0001>
module attributes {stable_mosaic.version = 11 : i64} {
  func.func @kernel(%arg0: i32, %arg1: i32, %arg2: memref<128x128xi8, #tpu.memory_space<vmem>>, %arg3: memref<256x128xbf16, #tpu.memory_space<vmem>>, %arg4: memref<128x1xf32, #tpu.memory_space<vmem>>, %arg5: memref<1x128xf32, #tpu.memory_space<vmem>>, %arg6: memref<128x128xf32, #tpu.memory_space<vmem>>, %arg7: memref<128x128xf32, #tpu.memory_space<vmem>>) attributes {dimension_semantics = [#tpu.dimension_semantics<parallel>, #tpu.dimension_semantics<arbitrary>], iteration_bounds = array<i64: 2, 2>, scalar_prefetch = 0 : i64, scratch_operands = 1 : i64, tpu.core_type = #tpu.core_type<tc>, window_params = [{transform_indices = @transform_0, window_bounds = array<i64: 128, 128>}, {pipeline_mode = #tpu.pipeline_mode<synchronous>, transform_indices = @transform_1, window_bounds = array<i64: 256, 128>}, {transform_indices = @transform_2, window_bounds = array<i64: 128, 1>}, {pipeline_mode = #tpu.pipeline_mode<synchronous>, transform_indices = @transform_3, window_bounds = array<i64: 1, 128>}, {transform_indices = @transform_4, window_bounds = array<i64: 128, 128>}]} {
    %c0_i32 = arith.constant 0 : i32
    %0 = arith.cmpi eq, %arg1, %c0_i32 : i32
    %1 = arith.extui %0 : i1 to i32
    %c0_i32_0 = arith.constant 0 : i32
    %2 = arith.cmpi ne, %1, %c0_i32_0 : i32
    scf.if %2 {
      %cst_8 = arith.constant 0.000000e+00 : f32
      %17 = vector.broadcast %cst_8 : f32 to vector<128x128xf32>
      %c0_9 = arith.constant 0 : index
      %c0_10 = arith.constant 0 : index
      %18 = vector.load %arg7[%c0_9, %c0_10] : memref<128x128xf32, #tpu.memory_space<vmem>>, vector<128x128xf32>
      tpu.vector_store %arg7[%c0_9, %c0_10], %17 {strides = array<i32>} : memref<128x128xf32, #tpu.memory_space<vmem>>, vector<128x128xf32>,
    } else {
    }
    %c0 = arith.constant 0 : index
    %c0_1 = arith.constant 0 : index
    %3 = vector.load %arg2[%c0, %c0_1] : memref<128x128xi8, #tpu.memory_space<vmem>>, vector<128x128xi8>
    %4 = arith.sitofp %3 : vector<128x128xi8> to vector<128x128xf32>
    %5 = arith.truncf %4 : vector<128x128xf32> to vector<128x128xbf16>
    %c128_i32 = arith.constant 128 : i32
    %6 = arith.muli %arg1, %c128_i32 : i32
    %7 = tpu.assume_multiple %6, 128 : i32
    %8 = arith.index_cast %7 : i32 to index
    %c0_2 = arith.constant 0 : index
    %9 = vector.load %arg3[%8, %c0_2] : memref<256x128xbf16, #tpu.memory_space<vmem>>, vector<128x128xbf16>
    %c0_3 = arith.constant 0 : index
    %c0_4 = arith.constant 0 : index
    %10 = vector.load %arg7[%c0_3, %c0_4] : memref<128x128xf32, #tpu.memory_space<vmem>>, vector<128x128xf32>
    %cst = arith.constant dense<0.000000e+00> : vector<128x128xf32>
    %11 = tpu.matmul %5, %9, %cst {dimension_numbers = #tpu.dot_dimension_numbers<[1], [0], [0], [1], [0, 0, 1, 1], [], []>} : vector<128x128xbf16>, vector<128x128xbf16>, vector<128x128xf32> -> vector<128x128xf32>
    %12 = arith.addf %10, %11 : vector<128x128xf32>
    %c0_5 = arith.constant 0 : index
    %c0_6 = arith.constant 0 : index
    %13 = vector.load %arg7[%c0_5, %c0_6] : memref<128x128xf32, #tpu.memory_space<vmem>>, vector<128x128xf32>
    tpu.vector_store %arg7[%c0_5, %c0_6], %12 {strides = array<i32>} : memref<128x128xf32, #tpu.memory_space<vmem>>, vector<128x128xf32>,
    %c1_i32 = arith.constant 1 : i32
    %14 = arith.cmpi eq, %arg1, %c1_i32 : i32
    %15 = arith.extui %14 : i1 to i32
    %c0_i32_7 = arith.constant 0 : i32
    %16 = arith.cmpi ne, %15, %c0_i32_7 : i32
    scf.if %16 {
      %c0_8 = arith.constant 0 : index
      %c0_9 = arith.constant 0 : index
      %17 = vector.load %arg4[%c0_8, %c0_9] : memref<128x1xf32, #tpu.memory_space<vmem>>, vector<128x1xf32>
      %c0_10 = arith.constant 0 : index
      %c0_11 = arith.constant 0 : index
      %18 = vector.load %arg7[%c0_10, %c0_11] : memref<128x128xf32, #tpu.memory_space<vmem>>, vector<128x128xf32>
      %19 = vector.broadcast %17 : vector<128x1xf32> to vector<128x128xf32>
      %20 = arith.mulf %19, %18 : vector<128x128xf32>
      %c0_12 = arith.constant 0 : index
      %c0_13 = arith.constant 0 : index
      %21 = vector.load %arg5[%c0_12, %c0_13] : memref<1x128xf32, #tpu.memory_space<vmem>>, vector<1x128xf32>
      %22 = vector.broadcast %21 : vector<1x128xf32> to vector<128x128xf32>
      %23 = arith.addf %20, %22 : vector<128x128xf32>
      %cst_14 = arith.constant dense<0xFF800000> : vector<128xf32>
      %24 = vector.multi_reduction <maximumf>, %23, %cst_14 [1] : vector<128x128xf32> to vector<128xf32>
      %25 = vector.shape_cast %24 : vector<128xf32> to vector<128x1xf32>
      %26 = vector.broadcast %25 : vector<128x1xf32> to vector<128x128xf32>
      %27 = arith.subf %23, %26 : vector<128x128xf32>
      %28 = math.exp %27 : vector<128x128xf32>
      %cst_15 = arith.constant dense<0.000000e+00> : vector<128xf32>
      %29 = vector.multi_reduction <add>, %28, %cst_15 [1] : vector<128x128xf32> to vector<128xf32>
      %30 = vector.shape_cast %29 : vector<128xf32> to vector<128x1xf32>
      %31 = math.log %30 : vector<128x1xf32>
      %32 = arith.addf %31, %25 : vector<128x1xf32>
      %33 = vector.broadcast %32 : vector<128x1xf32> to vector<128x128xf32>
      %34 = arith.subf %23, %33 : vector<128x128xf32>
      %c0_16 = arith.constant 0 : index
      %c0_17 = arith.constant 0 : index
      %35 = vector.load %arg6[%c0_16, %c0_17] : memref<128x128xf32, #tpu.memory_space<vmem>>, vector<128x128xf32>
      tpu.vector_store %arg6[%c0_16, %c0_17], %34 {strides = array<i32>} : memref<128x128xf32, #tpu.memory_space<vmem>>, vector<128x128xf32>,
    } else {
    }
    return
  }
  func.func @transform_0(%arg0: i32, %arg1: i32) -> (i32, i32) {
    %c0_i32 = arith.constant 0 : i32
    return %arg0, %arg1 : i32, i32
  }
  func.func @transform_1(%arg0: i32, %arg1: i32) -> (i32, i32) {
    %c0_i32 = arith.constant 0 : i32
    %c0_i32_0 = arith.constant 0 : i32
    %c0_i32_1 = arith.constant 0 : i32
    return %c0_i32, %c0_i32_0 : i32, i32
  }
  func.func @transform_2(%arg0: i32, %arg1: i32) -> (i32, i32) {
    %c0_i32 = arith.constant 0 : i32
    %c0_i32_0 = arith.constant 0 : i32
    return %arg0, %c0_i32 : i32, i32
  }
  func.func @transform_3(%arg0: i32, %arg1: i32) -> (i32, i32) {
    %c0_i32 = arith.constant 0 : i32
    %c0_i32_0 = arith.constant 0 : i32
    %c0_i32_1 = arith.constant 0 : i32
    return %c0_i32, %c0_i32_0 : i32, i32
  }
  func.func @transform_4(%arg0: i32, %arg1: i32) -> (i32, i32) {
    %c0_i32 = arith.constant 0 : i32
    %c0_i32_0 = arith.constant 0 : i32
    return %arg0, %c0_i32 : i32, i32
  }
}

</mosaic_0001>

<bundles_post_ra>
// kernel: tpu_custom_call.1
= control target key start
LH: loop header
LB: loop body
LE: loop exit
PB: predicated region body
PF: predicated region fallthrough
CT: control target
= control target key end

     0   :  { %s1791_s0 = inlined_call_operand.vmem [shape: s8[256,256], index: 0, kind: input, shape index: {}]   ;;  %s1792_s1 = inlined_call_operand.vmem [shape: bf16[256,128], index: 1, kind: input, shape index: {}]   ;;  %s1793_s2 = inlined_call_operand.vmem [shape: f32[256,1], index: 2, kind: input, shape index: {}]   ;;  %s1794_s3 = inlined_call_operand.vmem [shape: f32[1,128], index: 3, kind: input, shape index: {}]   ;;  %s1795_s4 = inlined_call_operand.hbm [shape: f32[256,128], index: 4, kind: output, shape index: {}]  }
   0x1   :  { %1796 = sst [smem:[#allocation7_spill]] %s1791_s0 }
   0x2   :  { %9 = vsyncpa [#allocation5], 0 }
   0x3   :  { %11 = vsyncpa [#allocation5 + $0x1], 0  ;;  %s1390_s15 = smov 0   ;;  %s1392_s16 = smov 0  }
   0x4   :  { %s1394_s17 = smov 0   ;;  %s1396_s18 = smov 0  }
   0x5   :  { %s1398_s19 = smov 0   ;;  %s1400_s20 = smov 0  }
   0x6   :  { %s1402_s21 = smov 0   ;;  %s1404_s22 = smov 0  }
   0x7   :  { %s1406_s23 = smov 0   ;;  %s1408_s24 = smov 0  }
   0x8 LB: > { %s986_s25 = sadd.s32 4294967295, %s1358_s24   ;;  %s987_s26 = sadd.s32 4294967294, %s1358_s24   ;;  %s1358_s24 = sphi %s1408_s24, %s17_s24   ;;  %s1354_s23 = sphi %s1406_s23, %s1809_s23   ;;  %s1350_s22 = sphi %s1404_s22, %s1808_s22   ;;  %s1346_s21 = sphi %s1402_s21, %s1807_s21   ;;  %s1342_s20 = sphi %s1400_s20, %s1806_s20   ;;  %s1338_s19 = sphi %s1398_s19, %s1805_s19   ;;  %s1334_s18 = sphi %s1396_s18, %s1804_s18   ;;  %s1330_s17 = sphi %s1394_s17, %s1803_s17   ;;  %s1326_s16 = sphi %s1392_s16, %s1802_s16   ;;  %s1322_s15 = sphi %s1390_s15, %s1801_s15  }
   0x9   : > { %s26_s27 = sadd.s32 1, %s1350_s22  ;;  %s29_s28 = sadd.s32 1, %s1354_s23 }
   0xa   : > { %p27_p0 = scmp.ge.s32.totalorder %s26_s27, 2  ;;  %s38_s29 = sadd.s32 1, %s1338_s19 }
   0xb   : > { %p45_p1 = scmp.ne.s32.totalorder %s1338_s19, %s1334_s18  ;;  %p46_p2 = scmp.eq.s32.totalorder %s1358_s24, 0 }
   0xc   : > { %s1811_s27 = smov (%p27_p0, %s26_s27), 0  ;;  %s1813_s28 = smov (!%p27_p0, %s29_s28), %s1354_s23 }
   0xd   : > { %s34_s30 = ssub.s32 %s1350_s22, %s1811_s27  ;;  %p1453_p3 = por %p46_p2, %p45_p1 }
   0xe   : > { %p31_p4 = scmp.ge.s32.totalorder %s1813_s28, 2  ;;  %s132_s6 = sadd.s32 1, %s1330_s17 }
   0xf   : > { %p142_p5 = scmp.ne.s32.totalorder %s1330_s17, %s1326_s16  ;;  %p143_p6 = scmp.eq.s32.totalorder %s986_s25, 3 }
  0x10   : > { %s1815_s28 = smov (%p31_p4, %s1813_s28), 0  ;;  %p148_p8 = scmp.ne.s32.totalorder %s1326_s16, %s1322_s15 }
  0x11   : > { %p1462_p7 = por %p143_p6, %p142_p5  ;;  %s33_s8 = ssub.s32 %s1354_s23, %s1815_s28 }
  0x12   : > { %p149_p9 = scmp.eq.s32.totalorder %s987_s26, 3  ;;  %s35_s9 = sor.u32 %s34_s30, %s33_s8 }
  0x13   : > { %p130_p10 = scmp.eq.s32.totalorder %s33_s8, 0  ;;  %p36_p11 = scmp.eq.s32.totalorder %s35_s9, 0 }
  0x14   : > { %p1470_p12 = por %p149_p9, %p148_p8  ;;  %p989_p13 = scmp.ge.s32.totalorder %s1358_s24, 4 }
  0x15   : > { %s1475_s11 = scalar_select %p130_p10, %s1330_s17, %s132_s6  }
  0x16   : > { %s1478_s12 = scalar_select %p36_p11, %s1338_s19, %s38_s29  }
  0x17   : > { %171 = sbr.rel (%p989_p13) target bundleno = 42 (0x2a), region = 24 }
  0x1e   : > { %174 = sbr.rel (!%p1453_p3) target bundleno = 42 (0x2a), region = 28  ;;  %s176_s13 = sand.u32 (%p1453_p3), 1, %s1338_s19  }
  0x1f   : > { %s1017_s14 = sshll.u32 (%p1453_p3), %s1354_s23, 3  ;;  %s990_s25 = sshll.u32 (%p1453_p3), %s176_s13, 5 }
  0x20   : > { %s181_s26 = sadd.s32 (%p1453_p3), %s1350_s22, %s1017_s14  ;;  %s1800_s0 = sld [smem:[#allocation7_spill]] (%p1453_p3) }
  0x21   : > { %s993_s30 = sshll.u32 (%p1453_p3), %s181_s26, 3  ;;  %s178_s29 = scalar_lea.vmem (%p1453_p3), [#allocation3], %s990_s25 }
  0x26   : > { %s183_s6 = scalar_lea.vmem %s1800_s0, %s993_s30 }
  0x27   : > { %v217_v0 = vld [vmem:[%s183_s6] sm:$0xff]  ;;  %v219_v1 = vld [vmem:[%s183_s6 + $0x10] sm:$0xff] }
  0x28   : > { %v221_v2 = vld [vmem:[%s183_s6 + $0x20] sm:$0xff]  ;;  %218 = vst [vmem:[%s178_s29] sm:$0xff] %v217_v0  ;;  %220 = vst [vmem:[%s178_s29 + $0x8] sm:$0xff] %v219_v1  ;;  %v223_v3 = vld [vmem:[%s183_s6 + $0x30] sm:$0xff] }
  0x29   : > { %222 = vst [vmem:[%s178_s29 + $0x10] sm:$0xff] %v221_v2  ;;  %224 = vst [vmem:[%s178_s29 + $0x18] sm:$0xff] %v223_v3 }
  0x2a PF: > { %p994_p0 = scmp.ge.s32.totalorder %s1358_s24, 1  ;;  %p238_p1 = scmp.lt.s32.totalorder %s1358_s24, 5 }
  0x2c   : > { %p239_p2 = pnand %p994_p0, %p238_p1 }
  0x2d   : > { %s245_s5 = sand.u32 (!%p239_p2), 1, %s1334_s18   ;;  %s272_s13 = sand.u32 (!%p239_p2), 1, %s1326_s16  }
  0x2e   : > { %242 = sbr.rel (%p239_p2) target bundleno = 792 (0x318), region = 70  ;;  %s995_s14 = sshll.u32 (!%p239_p2), %s245_s5, 5 }
  0x2f   : > { %s996_s25 = sshll.u32 (!%p239_p2), %s272_s13, 7  ;;  %s997_s26 = sshll.u32 (!%p239_p2), %s1346_s21, 4 }
  0x30   : > { %p277_p3 = scmp.lt.s32.totalorder (!%p239_p2), %s997_s26, 31  ;;  %s1501_s29 = scalar_lea.vmem (!%p239_p2), [#allocation3], %s995_s14 }
  0x31   : > { %s1503_s0 = scalar_lea.vmem (!%p239_p2), [#allocation4], %s996_s25  ;;  %p999_p4 = scmp.ne.s32.totalorder (!%p239_p2), %s1342_s20, 0 }
  0x35   : > { %s1817_s26 = smov (!%p277_p3, %s997_s26), 31  ;;  %287 = sbr.rel (%p999_p4) target bundleno = 63 (0x3f), region = 78 }
  0x36   : > { %s998_s30 = sshll.u32 %s1817_s26, 3  ;;  %v1360_v4 = vmov (!%p999_p4), 0.0  }
  0x37   : > { %s1499_s6 = scalar_lea.vmem %s1793_s2, %s998_s30  ;;  %288 = vst [vmem:[#allocation2] sm:$0xff] (!%p999_p4), %v1360_v4  ;;  %289 = vst [vmem:[#allocation2 + $0x8] sm:$0xff] (!%p999_p4), %v1360_v4 }
  0x38   : > { %290 = vst [vmem:[#allocation2 + $0x10] sm:$0xff] (!%p999_p4), %v1360_v4  ;;  %291 = vst [vmem:[#allocation2 + $0x18] sm:$0xff] (!%p999_p4), %v1360_v4 }
  0x39   : > { %292 = vst [vmem:[#allocation2 + $0x20] sm:$0xff] (!%p999_p4), %v1360_v4  ;;  %293 = vst [vmem:[#allocation2 + $0x28] sm:$0xff] (!%p999_p4), %v1360_v4 }
  0x3a   : > { %294 = vst [vmem:[#allocation2 + $0x30] sm:$0xff] (!%p999_p4), %v1360_v4  ;;  %295 = vst [vmem:[#allocation2 + $0x38] sm:$0xff] (!%p999_p4), %v1360_v4 }
  0x3b   : > { %296 = vst [vmem:[#allocation2 + $0x40] sm:$0xff] (!%p999_p4), %v1360_v4  ;;  %297 = vst [vmem:[#allocation2 + $0x48] sm:$0xff] (!%p999_p4), %v1360_v4 }
  0x3c   : > { %298 = vst [vmem:[#allocation2 + $0x50] sm:$0xff] %v1360_v4  ;;  %299 = vst [vmem:[#allocation2 + $0x58] sm:$0xff] %v1360_v4 }
  0x3d   : > { %300 = vst [vmem:[#allocation2 + $0x60] sm:$0xff] %v1360_v4  ;;  %301 = vst [vmem:[#allocation2 + $0x68] sm:$0xff] %v1360_v4 }
  0x3e   : > { %302 = vst [vmem:[#allocation2 + $0x70] sm:$0xff] %v1360_v4  ;;  %303 = vst [vmem:[#allocation2 + $0x78] sm:$0xff] %v1360_v4 }
  0x3f PF: > { %s1000_s18 = sshll.u32 %s1342_s20, 7  ;;  %v304_v5 = vld [vmem:[%s1501_s29] sm:$0xff]  ;;  %v306_v6 = vld [vmem:[%s1501_s29 + $0x10] sm:$0xff]  ;;  %v305_v17 = vld [vmem:[%s1501_s29 + $0x8] sm:$0xff]  ;;  %p1010_p5 = scmp.ne.s32.totalorder %s1342_s20, 1 }
  0x40   : > { %s317_s5 = sshra.s32 %s1000_s18, 3  ;;  %v308_v7 = vunpack.c.l.s8.bf16 %v304_v5  ;;  %v312_v8 = vunpack.c.l.s8.bf16 %v306_v6  ;;  %v307_v18 = vld [vmem:[%s1501_s29 + $0x18] sm:$0xff]  ;;  %v309_v19 = vunpack.c.h.s8.bf16 %v304_v5  ;;  %v313_v20 = vunpack.c.h.s8.bf16 %v306_v6 }
  0x41   : > { %s1001_s14 = sshll.u32 %s317_s5, 2  ;;  %v310_v21 = vunpack.c.l.s8.bf16 %v305_v17  ;;  %v314_v22 = vunpack.c.l.s8.bf16 %v307_v18  ;;  %v311_v23 = vunpack.c.h.s8.bf16 %v305_v17  ;;  %v315_v24 = vunpack.c.h.s8.bf16 %v307_v18  ;;  %v337_v27 = vld [vmem:[#allocation2] sm:$0xff]  ;;  %v338_v37 = vld [vmem:[#allocation2 + $0x8] sm:$0xff]  ;;  %v540_v17 = vld [vmem:[%s1499_s6 + $0x30] sm:$0xff] (!%p1010_p5) }
  0x42   : > { %s1512_s30 = scalar_lea.vmem %s1792_s1, %s1001_s14  ;;  %1051 = vmatprep.mubr.bf16.mxu0 %v308_v7  ;;  %1059 = vmatprep.mubr.bf16.mxu1 %v312_v8  ;;  %v339_v25 = vld [vmem:[#allocation2 + $0x10] sm:$0xff]  ;;  %v340_v31 = vld [vmem:[#allocation2 + $0x18] sm:$0xff]  ;;  %v543_v18 = vld [vmem:[%s1499_s6 + $0x48] sm:$0xff] (!%p1010_p5) }
  0x43   : > { %v1174_v9 = vld [vmem:[%s1512_s30] sm:$0xff]   ;;  %v1175_v10 = vld [vmem:[%s1512_s30 + $0x8] sm:$0xff]   ;;  %v1176_v11 = vld [vmem:[%s1512_s30 + $0x10] sm:$0xff]  }
  0x44   : > { %1035 = vmatprep.subr.bf16.mxu0 %v1174_v9  ;;  %1067 = vmatprep.subr.bf16.mxu1 %v1174_v9  ;;  %v1177_v12 = vld [vmem:[%s1512_s30 + $0x18] sm:$0xff]   ;;  %v1178_v13 = vld [vmem:[%s1512_s30 + $0x20] sm:$0xff]   ;;  %v1179_v14 = vld [vmem:[%s1512_s30 + $0x28] sm:$0xff]  }
  0x45   : > { %1036 = vmatpush3.bf16.msra.mxu0 %v1174_v9  ;;  %1075 = vmatpush3.bf16.msra.mxu1 %v1174_v9  ;;  %v1180_v15 = vld [vmem:[%s1512_s30 + $0x30] sm:$0xff]   ;;  %v1181_v16 = vld [vmem:[%s1512_s30 + $0x38] sm:$0xff]   ;;  %v345_v28 = vld [vmem:[#allocation2 + $0x40] sm:$0xff] }
  0x46   : > { %1037 = vmatprep.subr.bf16.mxu0 %v1175_v10  ;;  %1068 = vmatprep.subr.bf16.mxu1 %v1175_v10  ;;  %v347_v26 = vld [vmem:[#allocation2 + $0x50] sm:$0xff]  ;;  %v348_v32 = vld [vmem:[#allocation2 + $0x58] sm:$0xff]  ;;  %v346_v38 = vld [vmem:[#allocation2 + $0x48] sm:$0xff] }
  0x47   : > { %v343_v49 = vld [vmem:[#allocation2 + $0x30] sm:$0xff]  ;;  %v341_v51 = vld [vmem:[#allocation2 + $0x20] sm:$0xff]  ;;  %v344_v55 = vld [vmem:[#allocation2 + $0x38] sm:$0xff] }
  0x48   : > { %v351_v50 = vld [vmem:[#allocation2 + $0x70] sm:$0xff]  ;;  %v349_v52 = vld [vmem:[#allocation2 + $0x60] sm:$0xff]  ;;  %v352_v56 = vld [vmem:[#allocation2 + $0x78] sm:$0xff] }
  0x49   : > { %1038 = vmatpush3.bf16.msra.mxu0 %v1175_v10  ;;  %1076 = vmatpush3.bf16.msra.mxu1 %v1175_v10  ;;  %v342_v61 = vld [vmem:[#allocation2 + $0x28] sm:$0xff]  ;;  %v536_v9 = vld [vmem:[%s1499_s6 + $0x10] sm:$0xff] (!%p1010_p5)  ;;  %v534_v10 = vld [vmem:[%s1499_s6] sm:$0xff] (!%p1010_p5) }
  0x4a   : > { %1039 = vmatprep.subr.bf16.mxu0 %v1176_v11  ;;  %1069 = vmatprep.subr.bf16.mxu1 %v1176_v11  ;;  %v350_v62 = vld [vmem:[#allocation2 + $0x68] sm:$0xff] }
  0x4d   : > { %1040 = vmatpush3.bf16.msra.mxu0 %v1176_v11  ;;  %1077 = vmatpush3.bf16.msra.mxu1 %v1176_v11  ;;  %v1361_v11 = vmov (!%p1010_p5), 0  }
  0x4e   : > { %1041 = vmatprep.subr.bf16.mxu0 %v1177_v12  ;;  %1070 = vmatprep.subr.bf16.mxu1 %v1177_v12 }
  0x4f   : > { %1183 = vset.pattern.permute.xlu1 (!%p1010_p5), %v1361_v11  ;;  %1182 = vset.pattern.permute.xlu0 (!%p1010_p5), %v1361_v11 }
  0x50   : > { %578 = vperm.xlu1 (!%p1010_p5), %1183, %v536_v9   ;;  %568 = vperm.xlu0 (!%p1010_p5), %1182, %v534_v10  }
  0x51   : > { %1042 = vmatpush3.bf16.msra.mxu0 %v1177_v12  ;;  %1078 = vmatpush3.bf16.msra.mxu1 %v1177_v12  ;;  %v537_v12 = vld [vmem:[%s1499_s6 + $0x18] sm:$0xff] (!%p1010_p5) }
  0x52   : > { %1043 = vmatprep.subr.bf16.mxu0 %v1178_v13  ;;  %1071 = vmatprep.subr.bf16.mxu1 %v1178_v13 }
  0x54   : > { %583 = vperm.xlu1 (!%p1010_p5), %1183, %v537_v12  }
  0x55   : > { %1044 = vmatpush3.bf16.msra.mxu0 %v1178_v13  ;;  %1079 = vmatpush3.bf16.msra.mxu1 %v1178_v13  ;;  %v535_v13 = vld [vmem:[%s1499_s6 + $0x8] sm:$0xff] (!%p1010_p5) }
  0x56   : > { %1045 = vmatprep.subr.bf16.mxu0 %v1179_v14  ;;  %1072 = vmatprep.subr.bf16.mxu1 %v1179_v14 }
  0x57   : > { %573 = vperm.xlu0 (!%p1010_p5), %1182, %v535_v13  }
  0x59   : > { %1046 = vmatpush3.bf16.msra.mxu0 %v1179_v14  ;;  %1080 = vmatpush3.bf16.msra.mxu1 %v1179_v14  ;;  %v539_v14 = vld [vmem:[%s1499_s6 + $0x28] sm:$0xff] (!%p1010_p5) }
  0x5a   : > { %1047 = vmatprep.subr.bf16.mxu0 %v1180_v15  ;;  %1073 = vmatprep.subr.bf16.mxu1 %v1180_v15 }
  0x5b   : > { %593 = vperm.xlu1 (!%p1010_p5), %1183, %v539_v14  }
  0x5d   : > { %1048 = vmatpush3.bf16.msra.mxu0 %v1180_v15  ;;  %1081 = vmatpush3.bf16.msra.mxu1 %v1180_v15  ;;  %v538_v15 = vld [vmem:[%s1499_s6 + $0x20] sm:$0xff] (!%p1010_p5) }
  0x5e   : > { %1049 = vmatprep.subr.bf16.mxu0 %v1181_v16  ;;  %1074 = vmatprep.subr.bf16.mxu1 %v1181_v16 }
  0x5f   : > { %588 = vperm.xlu0 (!%p1010_p5), %1182, %v538_v15  }
  0x61   : > { %1050 = vmatpush3.bf16.msra.mxu0 %v1181_v16  ;;  %1082 = vmatpush3.bf16.msra.mxu1 %v1181_v16  ;;  %v541_v16 = vld [vmem:[%s1499_s6 + $0x38] sm:$0xff] (!%p1010_p5) }
  0x62   : > { %603 = vperm.xlu1 (!%p1010_p5), %1183, %v541_v16  }
  0x63   : > { %598 = vperm.xlu0 (!%p1010_p5), %1182, %v540_v17  }
  0x64   : > { %1052 = vmatmul.mubr.bf16.vlgmr.msra.gmra.mrb[0].mxu0 %v309_v19  ;;  %1060 = vmatmul.mubr.bf16.vlgmr.msra.gmra.mrb[0].mxu1 %v313_v20  ;;  %v542_v19 = vld [vmem:[%s1499_s6 + $0x40] sm:$0xff] (!%p1010_p5)  ;;  %v545_v20 = vld [vmem:[%s1499_s6 + $0x58] sm:$0xff] (!%p1010_p5) }
  0x65   : > { %1055 = vmatprep.mubr.bf16.mxu0 %v310_v21  ;;  %1063 = vmatprep.mubr.bf16.mxu1 %v314_v22  ;;  %v544_v21 = vld [vmem:[%s1499_s6 + $0x50] sm:$0xff] (!%p1010_p5)  ;;  %v547_v22 = vld [vmem:[%s1499_s6 + $0x68] sm:$0xff] (!%p1010_p5) }
  0x66   : > { %613 = vperm.xlu1 (!%p1010_p5), %1183, %v543_v18  }
  0x67   : > { %608 = vperm.xlu0 (!%p1010_p5), %1182, %v542_v19  }
  0x6a   : > { %623 = vperm.xlu1 (!%p1010_p5), %1183, %v545_v20  }
  0x6b   : > { %618 = vperm.xlu0 (!%p1010_p5), %1182, %v544_v21  }
  0x6c   : > { %1056 = vmatmul.mubr.bf16.gmra.mrb[4].mxu0 %v311_v23  ;;  %1064 = vmatmul.mubr.bf16.gmra.mrb[4].mxu1 %v315_v24  ;;  %v546_v23 = vld [vmem:[%s1499_s6 + $0x60] sm:$0xff] (!%p1010_p5)  ;;  %v549_v24 = vld [vmem:[%s1499_s6 + $0x78] sm:$0xff] (!%p1010_p5) }
  0x6e   : > { %633 = vperm.xlu1 (!%p1010_p5), %1183, %v547_v22  }
  0x6f   : > { %628 = vperm.xlu0 (!%p1010_p5), %1182, %v546_v23  }
  0x72   : > { %643 = vperm.xlu1 (!%p1010_p5), %1183, %v549_v24  }
 0x137   : > { %v1053_v29 = vpop.f32.mrb[0].mxu0  ;;  %v1061_v30 = vpop.f32.mrb[0].mxu1 }
 0x138   : > { %v500_v33 = vadd.f32 %v1053_v29, %v339_v25  ;;  %v508_v34 = vadd.f32 %v1061_v30, %v347_v26  ;;  %v435_v35 = vpop.f32.mrb[1].mxu0  ;;  %v467_v36 = vpop.f32.mrb[1].mxu1  ;;  %v548_v25 = vld [vmem:[%s1499_s6 + $0x70] sm:$0xff] (!%p1010_p5) }
 0x139   : > { %v498_v39 = vadd.f32 %v435_v35, %v337_v27  ;;  %v506_v40 = vadd.f32 %v467_v36, %v345_v28  ;;  %v1054_v41 = vpop.f32.mrb[2].mxu0  ;;  %v1062_v42 = vpop.f32.mrb[2].mxu1  ;;  %638 = vperm.xlu0 (!%p1010_p5), %1182, %v548_v25   ;;  %v1544_v28 = vld [vmem:[%s1794_s3] ss:$0 sm:$0xff] (!%p1010_p5) }
 0x13a   : > { %516 = vst [vmem:[#allocation2 + $0x10] sm:$0xff] %v500_v33  ;;  %524 = vst [vmem:[#allocation2 + $0x50] sm:$0xff] %v508_v34  ;;  %v501_v43 = vadd.f32 %v1054_v41, %v340_v31  ;;  %v509_v44 = vadd.f32 %v1062_v42, %v348_v32  ;;  %v438_v45 = vpop.f32.mrb[3].mxu0  ;;  %v470_v46 = vpop.f32.mrb[3].mxu1 }
 0x13b   : > { %514 = vst [vmem:[#allocation2] sm:$0xff] %v498_v39  ;;  %522 = vst [vmem:[#allocation2 + $0x40] sm:$0xff] %v506_v40  ;;  %v499_v47 = vadd.f32 %v438_v45, %v338_v37  ;;  %v507_v48 = vadd.f32 %v470_v46, %v346_v38  ;;  %v579_v29 = vpop.permute.xlu1 (!%p1010_p5), %578  ;;  %v569_v30 = vpop.permute.xlu0 (!%p1010_p5), %568 }
 0x13c   : > { %517 = vst [vmem:[#allocation2 + $0x18] sm:$0xff] %v501_v43  ;;  %525 = vst [vmem:[#allocation2 + $0x58] sm:$0xff] %v509_v44 }
 0x13d   : > { %515 = vst [vmem:[#allocation2 + $0x8] sm:$0xff] %v499_v47  ;;  %523 = vst [vmem:[#allocation2 + $0x48] sm:$0xff] %v507_v48 }
 0x13f   : > { %v1057_v53 = vpop.f32.mrb[4].mxu0  ;;  %v1065_v54 = vpop.f32.mrb[4].mxu1  ;;  %533 = sbr.rel (%p1010_p5) target bundleno = 767 (0x2ff), region = 82 }
 0x140   : > { %v504_v57 = vadd.f32 %v1057_v53, %v343_v49  ;;  %v512_v58 = vadd.f32 %v1065_v54, %v351_v50  ;;  %v451_v59 = vpop.f32.mrb[5].mxu0  ;;  %v483_v60 = vpop.f32.mrb[5].mxu1 }
 0x141   : > { %v502_v63 = vadd.f32 %v451_v59, %v341_v51  ;;  %v510_v0 = vadd.f32 %v483_v60, %v349_v52  ;;  %v1058_v1 = vpop.f32.mrb[6].mxu0  ;;  %v1066_v2 = vpop.f32.mrb[6].mxu1  ;;  %v552_v26 = vld [vmem:[#allocation2 + $0x10] sm:$0xff] (!%p1010_p5) }
 0x142   : > { %520 = vst [vmem:[#allocation2 + $0x30] sm:$0xff] %v504_v57  ;;  %528 = vst [vmem:[#allocation2 + $0x70] sm:$0xff] %v512_v58  ;;  %v505_v3 = vadd.f32 %v1058_v1, %v344_v55  ;;  %v513_v4 = vadd.f32 %v1066_v2, %v352_v56  ;;  %v454_v5 = vpop.f32.mrb[7].mxu0  ;;  %v486_v6 = vpop.f32.mrb[7].mxu1  ;;  %v550_v27 = vld [vmem:[#allocation2] sm:$0xff] (!%p1010_p5)  ;;  %v648_v31 = vmul.f32 (!%p1010_p5), %v579_v29, %v552_v26 }
 0x143   : > { %518 = vst [vmem:[#allocation2 + $0x20] sm:$0xff] %v502_v63  ;;  %526 = vst [vmem:[#allocation2 + $0x60] sm:$0xff] %v510_v0  ;;  %v503_v7 = vadd.f32 %v454_v5, %v342_v61  ;;  %v511_v8 = vadd.f32 %v486_v6, %v350_v62  ;;  %v646_v32 = vmul.f32 (!%p1010_p5), %v569_v30, %v550_v27  ;;  %v553_v35 = vld [vmem:[#allocation2 + $0x18] sm:$0xff] (!%p1010_p5)  ;;  %v584_v36 = vpop.permute.xlu1 (!%p1010_p5), %583  ;;  %v574_v37 = vpop.permute.xlu0 (!%p1010_p5), %573  ;;  %v558_v55 = vld [vmem:[#allocation2 + $0x40] sm:$0xff] (!%p1010_p5) }
 0x144   : > { %521 = vst [vmem:[#allocation2 + $0x38] sm:$0xff] %v505_v3  ;;  %529 = vst [vmem:[#allocation2 + $0x78] sm:$0xff] %v513_v4  ;;  %v551_v33 = vld [vmem:[#allocation2 + $0x8] sm:$0xff] (!%p1010_p5)  ;;  %v1550_v38 = vadd.f32 (!%p1010_p5), %v1544_v28, %v648_v31  ;;  %v649_v41 = vmul.f32 (!%p1010_p5), %v584_v36, %v553_v35  ;;  %v560_v63 = vld [vmem:[#allocation2 + $0x50] sm:$0xff] (!%p1010_p5) }
 0x145   : > { %519 = vst [vmem:[#allocation2 + $0x28] sm:$0xff] %v503_v7  ;;  %527 = vst [vmem:[#allocation2 + $0x68] sm:$0xff] %v511_v8  ;;  %v1547_v34 = vadd.f32 (!%p1010_p5), %v1544_v28, %v646_v32  ;;  %v647_v39 = vmul.f32 (!%p1010_p5), %v574_v37, %v551_v33  ;;  %v559_v59 = vld [vmem:[#allocation2 + $0x48] sm:$0xff] (!%p1010_p5)  ;;  %v561_v3 = vld [vmem:[#allocation2 + $0x58] sm:$0xff] (!%p1010_p5) }
 0x146   : > { %v1559_v48 = vadd.f32 %v1544_v28, %v649_v41 }
 0x147   : > { %v1554_v42 = vadd.f32 %v1544_v28, %v647_v39  ;;  %v594_v44 = vpop.permute.xlu1 %593  ;;  %v589_v45 = vpop.permute.xlu0 %588 }
 0x149   : > { %687 = vmax.xlane.f32.xlu1 %v1554_v42  ;;  %v556_v47 = vld [vmem:[#allocation2 + $0x30] sm:$0xff] }
 0x14a   : > { %v554_v40 = vld [vmem:[#allocation2 + $0x20] sm:$0xff]  ;;  %v564_v15 = vld [vmem:[#allocation2 + $0x70] sm:$0xff] }
 0x14b   : > { %v650_v46 = vmul.f32 %v589_v45, %v554_v40  ;;  %v557_v51 = vld [vmem:[#allocation2 + $0x38] sm:$0xff]  ;;  %v604_v52 = vpop.permute.xlu1 %603  ;;  %v599_v53 = vpop.permute.xlu0 %598  ;;  %v562_v7 = vld [vmem:[#allocation2 + $0x60] sm:$0xff] }
 0x14c   : > { %v555_v43 = vld [vmem:[#allocation2 + $0x28] sm:$0xff]  ;;  %v652_v54 = vmul.f32 %v599_v53, %v556_v47  ;;  %v653_v57 = vmul.f32 %v604_v52, %v557_v51  ;;  %v565_v19 = vld [vmem:[#allocation2 + $0x78] sm:$0xff] }
 0x14d   : > { %v651_v49 = vmul.f32 %v594_v44, %v555_v43  ;;  %v1562_v50 = vadd.f32 %v1544_v28, %v650_v46  ;;  %v563_v11 = vld [vmem:[#allocation2 + $0x68] sm:$0xff] }
 0x14e   : > { %v1570_v58 = vadd.f32 %v1544_v28, %v652_v54  ;;  %v1575_v0 = vadd.f32 %v1544_v28, %v653_v57 }
 0x14f   : > { %693 = vmax.xlane.f32.xlu1 %v1562_v50  ;;  %v1567_v56 = vadd.f32 %v1544_v28, %v651_v49  ;;  %v614_v60 = vpop.permute.xlu1 %613  ;;  %v609_v61 = vpop.permute.xlu0 %608 }
 0x150   : > { %v654_v62 = vmul.f32 %v609_v61, %v558_v55  ;;  %v655_v1 = vmul.f32 %v614_v60, %v559_v59 }
 0x152   : > { %v1578_v2 = vadd.f32 %v1544_v28, %v654_v62  ;;  %v1583_v8 = vadd.f32 %v1544_v28, %v655_v1 }
 0x153   : > { %697 = vmax.xlane.f32.xlu1 %v1570_v58  ;;  %v624_v4 = vpop.permute.xlu1 %623  ;;  %v619_v5 = vpop.permute.xlu0 %618 }
 0x154   : > { %v656_v6 = vmul.f32 %v619_v5, %v560_v63  ;;  %v657_v9 = vmul.f32 %v624_v4, %v561_v3 }
 0x156   : > { %v1586_v10 = vadd.f32 %v1544_v28, %v656_v6  ;;  %v1591_v16 = vadd.f32 %v1544_v28, %v657_v9 }
 0x157   : > { %701 = vmax.xlane.f32.xlu1 %v1578_v2  ;;  %v634_v12 = vpop.permute.xlu1 %633  ;;  %v629_v13 = vpop.permute.xlu0 %628 }
 0x158   : > { %685 = vmax.xlane.f32.xlu0 %v1547_v34  ;;  %v658_v14 = vmul.f32 %v629_v13, %v562_v7  ;;  %v659_v17 = vmul.f32 %v634_v12, %v563_v11 }
 0x15a   : > { %v1594_v18 = vadd.f32 %v1544_v28, %v658_v14  ;;  %v1599_v23 = vadd.f32 %v1544_v28, %v659_v17 }
 0x15b   : > { %705 = vmax.xlane.f32.xlu1 %v1586_v10  ;;  %v644_v20 = vpop.permute.xlu1 %643 }
 0x15c   : > { %689 = vmax.xlane.f32.xlu0 %v1550_v38  ;;  %v661_v24 = vmul.f32 %v644_v20, %v565_v19 }
 0x15e   : > { %v1607_v26 = vadd.f32 %v1544_v28, %v661_v24 }
 0x15f   : > { %709 = vmax.xlane.f32.xlu1 %v1594_v18 }
 0x160   : > { %691 = vmax.xlane.f32.xlu0 %v1559_v48 }
 0x164   : > { %695 = vmax.xlane.f32.xlu0 %v1567_v56 }
 0x168   : > { %699 = vmax.xlane.f32.xlu0 %v1575_v0 }
 0x16c   : > { %703 = vmax.xlane.f32.xlu0 %v1583_v8 }
 0x170   : > { %707 = vmax.xlane.f32.xlu0 %v1591_v16 }
 0x174   : > { %711 = vmax.xlane.f32.xlu0 %v1599_v23 }
 0x178   : > { %715 = vmax.xlane.f32.xlu0 %v1607_v26 }
 0x1b8   : > { %v639_v21 = vpop.permute.xlu0 %638 }
 0x1b9   : > { %v660_v22 = vmul.f32 %v639_v21, %v564_v15 }
 0x1bb   : > { %v1602_v25 = vadd.f32 %v1544_v28, %v660_v22 }
 0x1bd   : > { %713 = vmax.xlane.f32.xlu1 %v1602_v25 }
 0x1d6   : > { %v1614_v31 = vpop.xlane.xlu1 %687 }
 0x1d7   : > { %v718_v33 = vsub.f32 %v1554_v42, %v1614_v31 }
 0x1d9   : > { %v735_v35 = vmul.f32 1.442695, %v718_v33 }
 0x1dc   : > { %v1622_v37 = vpop.xlane.xlu1 %693 }
 0x1dd   : > { %v721_v40 = vsub.f32 %v1562_v50, %v1622_v37 }
 0x1df   : > { %v741_v43 = vmul.f32 1.442695, %v721_v40 }
 0x1e0   : > { %v1630_v45 = vpop.xlane.xlu1 %697 }
 0x1e1   : > { %v723_v47 = vsub.f32 %v1570_v58, %v1630_v45 }
 0x1e3   : > { %v745_v52 = vmul.f32 1.442695, %v723_v47 }
 0x1e4   : > { %v1638_v54 = vpop.xlane.xlu1 %701 }
 0x1e5   : > { %v1610_v27 = vpop.xlane.xlu0 %685  ;;  %v725_v57 = vsub.f32 %v1578_v2, %v1638_v54 }
 0x1e6   : > { %v717_v29 = vsub.f32 %v1547_v34, %v1610_v27 }
 0x1e7   : > { %v749_v61 = vmul.f32 1.442695, %v725_v57 }
 0x1e8   : > { %v733_v30 = vmul.f32 1.442695, %v717_v29  ;;  %v1646_v1 = vpop.xlane.xlu1 %705 }
 0x1e9   : > { %v1616_v32 = vpop.xlane.xlu0 %689  ;;  %v727_v4 = vsub.f32 %v1586_v10, %v1646_v1 }
 0x1ea   : > { %1184 = vpow2.f32 %v733_v30  ;;  %v719_v28 = vsub.f32 %v1550_v38, %v1616_v32 }
 0x1eb   : > { %1186 = vpow2.f32 %v735_v35  ;;  %v753_v7 = vmul.f32 1.442695, %v727_v4 }
 0x1ec   : > { %v737_v36 = vmul.f32 1.442695, %v719_v28  ;;  %v1654_v12 = vpop.xlane.xlu1 %709 }
 0x1ed   : > { %v1624_v39 = vpop.xlane.xlu0 %691  ;;  %v729_v14 = vsub.f32 %v1594_v18, %v1654_v12 }
 0x1ee   : > { %v720_v41 = vsub.f32 %v1559_v48, %v1624_v39  ;;  %1188 = vpow2.f32 %v737_v36 }
 0x1ef   : > { %1190 = vpow2.f32 %v741_v43  ;;  %v757_v19 = vmul.f32 1.442695, %v729_v14 }
 0x1f0   : > { %v739_v44 = vmul.f32 1.442695, %v720_v41 }
 0x1f1   : > { %v1632_v46 = vpop.xlane.xlu0 %695 }
 0x1f2   : > { %v722_v49 = vsub.f32 %v1567_v56, %v1632_v46  ;;  %1192 = vpow2.f32 %v739_v44 }
 0x1f3   : > { %1194 = vpow2.f32 %v745_v52 }
 0x1f4   : > { %v1185_v51 = vpop.eup %1184  ;;  %v743_v53 = vmul.f32 1.442695, %v722_v49 }
 0x1f5   : > { %765 = vadd.xlane.f32.xlu1 %v1185_v51  ;;  %v1640_v55 = vpop.xlane.xlu0 %699  ;;  %v1187_v60 = vpop.eup %1186 }
 0x1f6   : > { %v724_v59 = vsub.f32 %v1575_v0, %v1640_v55  ;;  %1196 = vpow2.f32 %v743_v53  ;;  %767 = vadd.xlane.f32.xlu0 %v1187_v60 }
 0x1f7   : > { %1198 = vpow2.f32 %v749_v61 }
 0x1f8   : > { %v747_v62 = vmul.f32 1.442695, %v724_v59  ;;  %v1189_v63 = vpop.eup %1188 }
 0x1f9   : > { %v1648_v3 = vpop.xlane.xlu0 %703  ;;  %769 = vadd.xlane.f32.xlu1 %v1189_v63  ;;  %v1191_v6 = vpop.eup %1190 }
 0x1fa   : > { %v726_v5 = vsub.f32 %v1583_v8, %v1648_v3  ;;  %1200 = vpow2.f32 %v747_v62 }
 0x1fb   : > { %1202 = vpow2.f32 %v753_v7 }
 0x1fc   : > { %v751_v9 = vmul.f32 1.442695, %v726_v5  ;;  %v1193_v11 = vpop.eup %1192 }
 0x1fd   : > { %v1656_v13 = vpop.xlane.xlu0 %707  ;;  %773 = vadd.xlane.f32.xlu1 %v1191_v6  ;;  %771 = vadd.xlane.f32.xlu0 %v1193_v11  ;;  %v1195_v17 = vpop.eup %1194 }
 0x1fe   : > { %v728_v15 = vsub.f32 %v1591_v16, %v1656_v13  ;;  %1204 = vpow2.f32 %v751_v9 }
 0x1ff   : > { %1206 = vpow2.f32 %v757_v19 }
 0x200   : > { %v755_v20 = vmul.f32 1.442695, %v728_v15  ;;  %v1197_v21 = vpop.eup %1196 }
 0x201   : > { %v1664_v24 = vpop.xlane.xlu0 %711  ;;  %777 = vadd.xlane.f32.xlu1 %v1195_v17  ;;  %775 = vadd.xlane.f32.xlu0 %v1197_v21  ;;  %v1199_v33 = vpop.eup %1198 }
 0x202   : > { %v730_v30 = vsub.f32 %v1599_v23, %v1664_v24  ;;  %1208 = vpow2.f32 %v755_v20 }
 0x204   : > { %v759_v35 = vmul.f32 1.442695, %v730_v30  ;;  %v1201_v36 = vpop.eup %1200 }
 0x205   : > { %v1670_v40 = vpop.xlane.xlu0 %715  ;;  %781 = vadd.xlane.f32.xlu1 %v1199_v33  ;;  %779 = vadd.xlane.f32.xlu0 %v1201_v36  ;;  %v1203_v43 = vpop.eup %1202 }
 0x206   : > { %v732_v41 = vsub.f32 %v1607_v26, %v1670_v40 }
 0x208   : > { %v763_v44 = vmul.f32 1.442695, %v732_v41  ;;  %v1205_v47 = vpop.eup %1204 }
 0x209   : > { %785 = vadd.xlane.f32.xlu1 %v1203_v43  ;;  %783 = vadd.xlane.f32.xlu0 %v1205_v47  ;;  %v1207_v49 = vpop.eup %1206 }
 0x20c   : > { %v1209_v51 = vpop.eup %1208 }
 0x20d   : > { %789 = vadd.xlane.f32.xlu1 %v1207_v49  ;;  %787 = vadd.xlane.f32.xlu0 %v1209_v51 }
 0x24a   : > { %v1662_v22 = vpop.xlane.xlu1 %713 }
 0x24b   : > { %v731_v29 = vsub.f32 %v1602_v25, %v1662_v22 }
 0x24d   : > { %v761_v28 = vmul.f32 1.442695, %v731_v29 }
 0x24f   : > { %1210 = vpow2.f32 %v761_v28 }
 0x250   : > { %1212 = vpow2.f32 %v759_v35 }
 0x251   : > { %1214 = vpow2.f32 %v763_v44 }
 0x259   : > { %v1211_v52 = vpop.eup %1210 }
 0x25a   : > { %v1213_v53 = vpop.eup %1212  ;;  %793 = vadd.xlane.f32.xlu1 %v1211_v52 }
 0x25b   : > { %791 = vadd.xlane.f32.xlu0 %v1213_v53  ;;  %v1215_v57 = vpop.eup %1214 }
 0x25f   : > { %795 = vadd.xlane.f32.xlu0 %v1215_v57 }
 0x282   : > { %v766_v59 = vpop.xlane.xlu1 %765 }
 0x283   : > { %1216 = vlog2.f32 %v766_v59  ;;  %v768_v60 = vpop.xlane.xlu0 %767 }
 0x284   : > { %1218 = vlog2.f32 %v768_v60 }
 0x286   : > { %v770_v61 = vpop.xlane.xlu1 %769 }
 0x287   : > { %1220 = vlog2.f32 %v770_v61 }
 0x28a   : > { %v774_v62 = vpop.xlane.xlu1 %773  ;;  %v772_v63 = vpop.xlane.xlu0 %771 }
 0x28b   : > { %1222 = vlog2.f32 %v774_v62 }
 0x28c   : > { %1224 = vlog2.f32 %v772_v63 }
 0x28d   : > { %v1217_v4 = vpop.eup %1216 }
 0x28e   : > { %v798_v5 = vmul.f32 0.6931472, %v1217_v4  ;;  %v778_v6 = vpop.xlane.xlu1 %777  ;;  %v776_v7 = vpop.xlane.xlu0 %775 }
 0x28f   : > { %1226 = vlog2.f32 %v778_v6  ;;  %v1219_v11 = vpop.eup %1218 }
 0x290   : > { %v829_v9 = vadd.f32 %v798_v5, %v1610_v27  ;;  %1228 = vlog2.f32 %v776_v7  ;;  %v800_v17 = vmul.f32 0.6931472, %v1219_v11 }
 0x291   : > { %v1221_v14 = vpop.eup %1220 }
 0x292   : > { %v845_v15 = vsub.f32 %v1547_v34, %v829_v9  ;;  %v802_v19 = vmul.f32 0.6931472, %v1221_v14  ;;  %v782_v20 = vpop.xlane.xlu1 %781  ;;  %v780_v21 = vpop.xlane.xlu0 %779  ;;  %v830_v29 = vadd.f32 %v800_v17, %v1614_v31 }
 0x293   : > { %1230 = vlog2.f32 %v782_v20 }
 0x294   : > { %861 = vst [vmem:[%s1503_s0] sm:$0xff] %v845_v15  ;;  %v831_v30 = vadd.f32 %v802_v19, %v1616_v32  ;;  %1232 = vlog2.f32 %v780_v21  ;;  %v846_v33 = vsub.f32 %v1554_v42, %v830_v29 }
 0x295   : > { %v1223_v27 = vpop.eup %1222 }
 0x296   : > { %v1225_v28 = vpop.eup %1224  ;;  %v847_v35 = vsub.f32 %v1550_v38, %v831_v30  ;;  %v806_v34 = vmul.f32 0.6931472, %v1223_v27  ;;  %v786_v36 = vpop.xlane.xlu1 %785  ;;  %862 = vst [vmem:[%s1503_s0 + $0x8] sm:$0xff] %v846_v33 }
 0x297   : > { %v784_v41 = vpop.xlane.xlu0 %783  ;;  %v804_v43 = vmul.f32 0.6931472, %v1225_v28  ;;  %1234 = vlog2.f32 %v786_v36 }
 0x298   : > { %863 = vst [vmem:[%s1503_s0 + $0x10] sm:$0xff] %v847_v35  ;;  %v833_v31 = vadd.f32 %v806_v34, %v1622_v37  ;;  %1236 = vlog2.f32 %v784_v41 }
 0x299   : > { %v1227_v32 = vpop.eup %1226  ;;  %v832_v44 = vadd.f32 %v804_v43, %v1624_v39 }
 0x29a   : > { %v1229_v47 = vpop.eup %1228  ;;  %v849_v42 = vsub.f32 %v1562_v50, %v833_v31  ;;  %v810_v49 = vmul.f32 0.6931472, %v1227_v32  ;;  %v790_v38 = vpop.xlane.xlu1 %789 }
 0x29b   : > { %v788_v51 = vpop.xlane.xlu0 %787  ;;  %v848_v52 = vsub.f32 %v1559_v48, %v832_v44  ;;  %v808_v53 = vmul.f32 0.6931472, %v1229_v47  ;;  %1238 = vlog2.f32 %v790_v38 }
 0x29c   : > { %865 = vst [vmem:[%s1503_s0 + $0x20] sm:$0xff] %v849_v42  ;;  %v835_v57 = vadd.f32 %v810_v49, %v1630_v45  ;;  %1240 = vlog2.f32 %v788_v51 }
 0x29d   : > { %v1231_v37 = vpop.eup %1230  ;;  %864 = vst [vmem:[%s1503_s0 + $0x18] sm:$0xff] %v848_v52  ;;  %v834_v39 = vadd.f32 %v808_v53, %v1632_v46 }
 0x29e   : > { %v1233_v59 = vpop.eup %1232  ;;  %v851_v50 = vsub.f32 %v1570_v58, %v835_v57  ;;  %v814_v60 = vmul.f32 0.6931472, %v1231_v37 }
 0x29f   : > { %v850_v48 = vsub.f32 %v1567_v56, %v834_v39  ;;  %v812_v63 = vmul.f32 0.6931472, %v1233_v59 }
 0x2a0   : > { %867 = vst [vmem:[%s1503_s0 + $0x30] sm:$0xff] %v851_v50  ;;  %v837_v45 = vadd.f32 %v814_v60, %v1638_v54 }
 0x2a1   : > { %v1235_v4 = vpop.eup %1234  ;;  %866 = vst [vmem:[%s1503_s0 + $0x28] sm:$0xff] %v850_v48  ;;  %v836_v46 = vadd.f32 %v812_v63, %v1640_v55 }
 0x2a2   : > { %v1237_v5 = vpop.eup %1236  ;;  %v853_v58 = vsub.f32 %v1578_v2, %v837_v45  ;;  %v818_v6 = vmul.f32 0.6931472, %v1235_v4 }
 0x2a3   : > { %v852_v56 = vsub.f32 %v1575_v0, %v836_v46  ;;  %v816_v9 = vmul.f32 0.6931472, %v1237_v5 }
 0x2a4   : > { %869 = vst [vmem:[%s1503_s0 + $0x40] sm:$0xff] %v853_v58  ;;  %v839_v11 = vadd.f32 %v818_v6, %v1646_v1 }
 0x2a5   : > { %v1239_v54 = vpop.eup %1238  ;;  %868 = vst [vmem:[%s1503_s0 + $0x38] sm:$0xff] %v852_v56  ;;  %v838_v14 = vadd.f32 %v816_v9, %v1648_v3 }
 0x2a6   : > { %v1241_v55 = vpop.eup %1240  ;;  %v855_v15 = vsub.f32 %v1586_v10, %v839_v11  ;;  %v822_v2 = vmul.f32 0.6931472, %v1239_v54 }
 0x2a7   : > { %v854_v17 = vsub.f32 %v1583_v8, %v838_v14  ;;  %v820_v19 = vmul.f32 0.6931472, %v1241_v55 }
 0x2a8   : > { %871 = vst [vmem:[%s1503_s0 + $0x50] sm:$0xff] %v855_v15  ;;  %v841_v0 = vadd.f32 %v822_v2, %v1654_v12 }
 0x2a9   : > { %870 = vst [vmem:[%s1503_s0 + $0x48] sm:$0xff] %v854_v17  ;;  %v840_v1 = vadd.f32 %v820_v19, %v1656_v13 }
 0x2aa   : > { %v857_v3 = vsub.f32 %v1594_v18, %v841_v0 }
 0x2ab   : > { %v856_v10 = vsub.f32 %v1591_v16, %v840_v1 }
 0x2ac   : > { %873 = vst [vmem:[%s1503_s0 + $0x60] sm:$0xff] %v857_v3 }
 0x2ad   : > { %872 = vst [vmem:[%s1503_s0 + $0x58] sm:$0xff] %v856_v10 }
 0x2e7   : > { %v794_v61 = vpop.xlane.xlu1 %793 }
 0x2e8   : > { %v792_v62 = vpop.xlane.xlu0 %791  ;;  %1242 = vlog2.f32 %v794_v61 }
 0x2e9   : > { %1244 = vlog2.f32 %v792_v62 }
 0x2ec   : > { %v796_v7 = vpop.xlane.xlu0 %795 }
 0x2ed   : > { %1246 = vlog2.f32 %v796_v7 }
 0x2f2   : > { %v1243_v20 = vpop.eup %1242 }
 0x2f3   : > { %v1245_v21 = vpop.eup %1244  ;;  %v826_v29 = vmul.f32 0.6931472, %v1243_v20 }
 0x2f4   : > { %v824_v30 = vmul.f32 0.6931472, %v1245_v21 }
 0x2f5   : > { %v843_v8 = vadd.f32 %v826_v29, %v1662_v22 }
 0x2f6   : > { %v842_v12 = vadd.f32 %v824_v30, %v1664_v24 }
 0x2f7   : > { %v1247_v27 = vpop.eup %1246  ;;  %v859_v33 = vsub.f32 %v1602_v25, %v843_v8 }
 0x2f8   : > { %v828_v28 = vmul.f32 0.6931472, %v1247_v27  ;;  %v858_v13 = vsub.f32 %v1599_v23, %v842_v12 }
 0x2f9   : > { %875 = vst [vmem:[%s1503_s0 + $0x70] sm:$0xff] %v859_v33 }
 0x2fa   : > { %v844_v18 = vadd.f32 %v828_v28, %v1670_v40  ;;  %874 = vst [vmem:[%s1503_s0 + $0x68] sm:$0xff] %v858_v13 }
 0x2fc   : > { %v860_v35 = vsub.f32 %v1607_v26, %v844_v18 }
 0x2fe   : > { %876 = vst [vmem:[%s1503_s0 + $0x78] sm:$0xff] %v860_v35 }
 0x2ff PF: > { %s1018_s9 = sshll.u32 %s1346_s21, 11  ;;  %s891_s5 = sshll.u32 %s1503_s0, 4  ;;  %s1729_s5 = int_to_ptr.vmem [resolvable:$true] %s891_s5 }
 0x300   : > { %s1726_s18 = scalar_lea.hbm %s1795_s4, %s1018_s9  ;;  %s1733_s14 = scalar_lea.sflag [#allocation5], %s272_s13 }
 0x301   : > { %s1248_s25 = scalar_lea.vmem %s1729_s5, 2048  ;;  %s1362_s21 = smov [#allocation4]  }
 0x302   : > { %p1249_p6 = scmp.ne.s32.totalorder %s1729_s5, %s1248_s25  ;;  %s1252_s26 = sshll.u32 %s1362_s21, 4  ;;  %s1253_s26 = int_to_ptr.vmem [resolvable:$false] %s1252_s26 }
 0x303   : > { %s1254_s30 = scalar_lea.vmem %s1253_s26, 4096  ;;  %p1255_p10 = scmp.lt.s32.totalorder %s1729_s5, %s1253_s26 }
 0x304   : > { %p1250_p8 = pnand %p1249_p6, %p1462_p7  ;;  %p1256_p11 = scmp.lt.s32.totalorder %s1254_s30, %s1248_s25 }
 0x306   : > { %p1251_p9 = pneg %p1250_p8  ;;  %p1257_p13 = por %p1256_p11, %p1255_p10 }
 0x308   : > { %p1258_p0 = pnand %p1257_p13, %p1251_p9 }
 0x30a   : > { %1261 = shalt.err (!%p1258_p0)
}
 0x30b   : > { %s1262_s0 = scalar_lea.hbm %s1726_s18, 2048  ;;  %s1266_s8 = scalar_lea.hbm %s1795_s4, 4096 }
 0x30c   : > { %p1263_p1 = scmp.ne.s32.totalorder %s1726_s18, %s1262_s0  ;;  %p1267_p4 = scmp.lt.u32.totalorder %s1726_s18, %s1795_s4 }
 0x30d   : > { %p1268_p5 = scmp.lt.u32.totalorder %s1266_s8, %s1262_s0  ;;  %p1270_p8 = scmp.lt.u32.totalorder %s1262_s0, %s1726_s18 }
 0x30e   : > { %p1264_p2 = pnand %p1263_p1, %p1462_p7 }
 0x30f   : > { %p1269_p6 = por %p1268_p5, %p1267_p4 }
 0x310   : > { %p1265_p3 = pneg %p1264_p2 }
 0x311   : > { %p1271_p9 = por %p1270_p8, %p1269_p6 }
 0x313   : > { %p1272_p10 = pnand %p1271_p9, %p1265_p3 }
 0x315   : > { %1275 = shalt.err (!%p1272_p10)
}
 0x316   : > { %s1363_s29 = smov 128   ;;  %s1364_s25 = smov 8  }
 0x317   : > { %1083 = dma.vmem_to_hbm [thread:$0]  (%p1462_p7), %s1729_s5, 2048, %s1726_s18, %s1733_s14, %s1363_s29, %s1363_s29, %s1364_s25  }
 0x318 PF: > { %p1089_p11 = scmp.ge.s32.totalorder %s1358_s24, 2  ;;  %s906_s21 = sand.u32 1, %s1322_s15  }
 0x319   : > { %s907_s26 = scalar_lea.sflag [#allocation5], %s906_s21 }
 0x31a   : > { %p1086_p13 = pnand %p1089_p11, %p1470_p12 }
 0x31c   : > { %1317 = dma.done.wait (!%p1086_p13), %s907_s26, 2048  }
 0x31d   : > { %1319 = vsyncadd (!%p1086_p13), %s907_s26, 4294965248  ;;  %s17_s24 = sadd.s32 1, %s1358_s24   ;;  %s1801_s15 = smov %s1326_s16 }
 0x31e   : > { %p14_p0 = scmp.ge.s32.totalorder %s17_s24, 6   ;;  %s1802_s16 = smov %s1330_s17 }
 0x31f   : > { %s1803_s17 = smov %s1475_s11  ;;  %s1804_s18 = smov %s1338_s19 }
 0x320   : > { %s1805_s19 = smov %s1478_s12  ;;  %s1806_s20 = smov %s1350_s22 }
 0x321   : > { %s1807_s21 = smov %s1354_s23  ;;  %s1808_s22 = smov %s1811_s27 }
 0x322   : > { %s1809_s23 = smov %s1815_s28  ;;  %16 = sbr.rel (!%p14_p0) target bundleno = 8 (0x8), region = 126 }
 0x329   :  { %912 = vsyncpa [#allocation5], 1 }
 0x32a   :  { %914 = vsyncpa [#allocation5 + $0x1], 1 }

</bundles_post_ra>
